<compile_context>
chip_gen: v6e
topology: v6e:2x2x1
jax: 0.10.0
libtpu: 0.0.40
codegen_flags: <defaults>
</compile_context>

<pallas_src>
from typing import NamedTuple

import numpy as np
import jax
import jax.numpy as jnp
from jax.experimental import pallas as pl
from jax.experimental.pallas import tpu as pltpu

EPS = 1e-5                 # torch.nn.InstanceNorm2d default eps
KANCHOR = 4                # synthetic anchor count (real vgtk uses 60)
INTRA_KERNEL_SIZE = 3      # synthetic intra-anchor kernel size (real vgtk: 13)
M_TILE_CAP = 1024          # max lanes per M tile (keeps big inputs VMEM-safe)


class SphericalPointCloud(NamedTuple):
    xyz: jnp.ndarray       # (B, 3, P)
    feats: jnp.ndarray     # (B, C, P, A)
    anchors: jnp.ndarray   # (A, 3, 3)


def _choose_m_tile(M, cap=M_TILE_CAP):
    """Largest multiple-of-128 divisor of M that is <= cap (fallback: full M)."""
    if M <= cap:
        return M
    t = (cap // 128) * 128
    while t >= 128:
        if M % t == 0:
            return t
        t -= 128
    return M


# ---------------------------------------------------------------------------
# Pallas kernels
# ---------------------------------------------------------------------------
def _so3conv_norm_relu_kernel(x_ref, w_ref, o_ref, sum_ref, ssq_ref):
    # x_ref : (K, Mt)      bf16 grouped-feature tile (K = C_in * kernel_size)
    # w_ref : (C_out, K)   bf16 BasicSO3Conv weight (resident, constant index_map)
    # o_ref : (C_out, M)   f32 conv output, VMEM-resident across the M-tile axis
    # sum_ref / ssq_ref : (C_out, 1) f32 running InstanceNorm statistics
    mi = pl.program_id(1)
    num_m = pl.num_programs(1)
    Mt = x_ref.shape[1]
    M = o_ref.shape[1]

    @pl.when(mi == 0)
    def _init():
        sum_ref[...] = jnp.zeros_like(sum_ref)
        ssq_ref[...] = jnp.zeros_like(ssq_ref)

    # Single fused MXU matmul: bf16 operands, f32 accumulation.
    y = jnp.dot(w_ref[...], x_ref[...], preferred_element_type=jnp.float32)

    # Phase-1 InstanceNorm statistics (global over the full (P, A) plane).
    sum_ref[...] += jnp.sum(y, axis=1, keepdims=True)
    ssq_ref[...] += jnp.sum(y * y, axis=1, keepdims=True)

    off = pl.multiple_of(mi * Mt, Mt)
    o_ref[:, pl.ds(off, Mt)] = y

    # Phase-2: normalize + ReLU in-place on the resident output block.
    @pl.when(mi == num_m - 1)
    def _finalize():
        inv_m = 1.0 / M
        mean = sum_ref[...] * inv_m
        var = jnp.maximum(ssq_ref[...] * inv_m - mean * mean, 0.0)  # biased var
        inv_std = jax.lax.rsqrt(var + EPS)
        o_ref[...] = jnp.maximum((o_ref[...] - mean) * inv_std, 0.0)


def so3conv_norm_relu(grouped, weight, m_tile_cap=M_TILE_CAP):
    """grouped: (B, K, M); weight: (C_out, K) -> (B, C_out, M) f32."""
    B, K, M = grouped.shape
    C_out = weight.shape[0]
    Mt = _choose_m_tile(M, m_tile_cap)
    num_m = M // Mt
    return pl.pallas_call(
        _so3conv_norm_relu_kernel,
        out_shape=jax.ShapeDtypeStruct((B, C_out, M), jnp.float32),
        grid_spec=pltpu.PrefetchScalarGridSpec(
            num_scalar_prefetch=0,
            grid=(B, num_m),
            in_specs=[
                pl.BlockSpec((None, K, Mt), lambda b, m: (b, 0, m)),
                pl.BlockSpec((C_out, K), lambda b, m: (0, 0)),
            ],
            # Output block index is constant over the M axis -> resident in VMEM.
            out_specs=pl.BlockSpec((None, C_out, M), lambda b, m: (b, 0, 0)),
            scratch_shapes=[pltpu.VMEM((C_out, 1), jnp.float32),
                            pltpu.VMEM((C_out, 1), jnp.float32)],
        ),
        compiler_params=pltpu.CompilerParams(
            dimension_semantics=("parallel", "arbitrary")),
    )(grouped.astype(jnp.bfloat16), weight.astype(jnp.bfloat16))


def _make_inter_kernel(NN, C_in, KS):
    def kernel(nbr_ref, wgt_ref, w_ref, o_ref, g_ref, sum_ref, ssq_ref):
        # nbr_ref: (NN*C_in, Mt) bf16, row index n*C_in + c
        # wgt_ref: (NN*KS, Mt)   bf16, row index n*KS + k (densely packed sublanes)
        # w_ref  : (C_out, C_in*KS) bf16, column index k*C_in + c (k-major reorder)
        # o_ref  : (C_out, M)    f32 output, resident across M tiles
        # g_ref  : (C_in*KS, Mt) f32 grouped-feature accumulator, row k*C_in + c
        mi = pl.program_id(1)
        num_m = pl.num_programs(1)
        Mt = g_ref.shape[1]
        M = o_ref.shape[1]

        @pl.when(mi == 0)
        def _init():
            sum_ref[...] = jnp.zeros_like(sum_ref)
            ssq_ref[...] = jnp.zeros_like(ssq_ref)

        g_ref[...] = jnp.zeros_like(g_ref)

        def accum(n):
            # one neighbor's features; elementwise math kept in f32 (v5e-safe)
            f = nbr_ref[pl.ds(n * C_in, C_in), :].astype(jnp.float32)       # (C_in, Mt)
            for k in range(KS):                                             # KS small, static
                wk = wgt_ref[pl.ds(n * KS + k, 1), :].astype(jnp.float32)   # (1, Mt)
                g_ref[k * C_in:(k + 1) * C_in, :] += f * wk

        if NN <= 8:
            for n in range(NN):            # static unroll; scratch-resident accumulation
                accum(n)
        else:
            def body(n, carry):
                accum(n)
                return carry
            jax.lax.fori_loop(0, NN, body, 0)

        # ONE fused matmul over the full C_in*KS contraction dim (bf16 -> f32 acc).
        y = jnp.dot(w_ref[...], g_ref[...].astype(jnp.bfloat16),
                    preferred_element_type=jnp.float32)                     # (C_out, Mt)

        sum_ref[...] += jnp.sum(y, axis=1, keepdims=True)
        ssq_ref[...] += jnp.sum(y * y, axis=1, keepdims=True)
        off = pl.multiple_of(mi * Mt, Mt)
        o_ref[:, pl.ds(off, Mt)] = y

        @pl.when(mi == num_m - 1)
        def _finalize():
            inv_m = 1.0 / M
            mean = sum_ref[...] * inv_m
            var = jnp.maximum(ssq_ref[...] * inv_m - mean * mean, 0.0)
            inv_std = jax.lax.rsqrt(var + EPS)
            o_ref[...] = jnp.maximum((o_ref[...] - mean) * inv_std, 0.0)

    return kernel


def inter_so3conv_norm_relu(nbr_flat, wgt_flat, weight_km, NN, C_in, KS,
                            m_tile_cap=M_TILE_CAP):
    """nbr_flat: (B, NN*C_in, M); wgt_flat: (B, NN*KS, M);
    weight_km: (C_out, C_in*KS) with column order k*C_in + c."""
    B, _, M = nbr_flat.shape
    C_out = weight_km.shape[0]
    Mt = _choose_m_tile(M, m_tile_cap)
    num_m = M // Mt
    kernel = _make_inter_kernel(NN, C_in, KS)
    return pl.pallas_call(
        kernel,
        out_shape=jax.ShapeDtypeStruct((B, C_out, M), jnp.float32),
        grid_spec=pltpu.PrefetchScalarGridSpec(
            num_scalar_prefetch=0,
            grid=(B, num_m),
            in_specs=[
                pl.BlockSpec((None, NN * C_in, Mt), lambda b, m: (b, 0, m)),
                pl.BlockSpec((None, NN * KS, Mt), lambda b, m: (b, 0, m)),
                pl.BlockSpec((C_out, C_in * KS), lambda b, m: (0, 0)),
            ],
            out_specs=pl.BlockSpec((None, C_out, M), lambda b, m: (b, 0, 0)),
            scratch_shapes=[pltpu.VMEM((C_in * KS, Mt), jnp.float32),
                            pltpu.VMEM((C_out, 1), jnp.float32),
                            pltpu.VMEM((C_out, 1), jnp.float32)],
        ),
        compiler_params=pltpu.CompilerParams(
            dimension_semantics=("parallel", "arbitrary")),
    )(nbr_flat.astype(jnp.bfloat16), wgt_flat.astype(jnp.bfloat16),
      weight_km.astype(jnp.bfloat16))


# ---------------------------------------------------------------------------
# Plain-JAX references (correctness spot-check of the kernels)
# ---------------------------------------------------------------------------
def _ref_so3conv_norm_relu(x, w):
    y = jnp.einsum('ok,bkm->bom', w, x, precision=jax.lax.Precision.HIGHEST)
    mean = jnp.mean(y, axis=2, keepdims=True)
    var = jnp.mean(jnp.square(y - mean), axis=2, keepdims=True)
    return jnp.maximum((y - mean) * jax.lax.rsqrt(var + EPS), 0.0)


def _ref_inter_so3conv_norm_relu(nbr, wgt, w_flat):
    # nbr: (B, NN, C_in, M); wgt: (B, NN, KS, M); w_flat: (C_out, C_in*KS) c-major
    B, NN, C_in, M = nbr.shape
    KS = wgt.shape[2]
    C_out = w_flat.shape[0]
    w3 = w_flat.reshape(C_out, C_in, KS)
    g = jnp.einsum('bncm,bnkm->bckm', nbr, wgt, precision=jax.lax.Precision.HIGHEST)
    y = jnp.einsum('ock,bckm->bom', w3, g, precision=jax.lax.Precision.HIGHEST)
    mean = jnp.mean(y, axis=2, keepdims=True)
    var = jnp.mean(jnp.square(y - mean), axis=2, keepdims=True)
    return jnp.maximum((y - mean) * jax.lax.rsqrt(var + EPS), 0.0)


# ---------------------------------------------------------------------------
# SO3 conv blocks (host glue + Pallas hot paths)
# ---------------------------------------------------------------------------
def intra_so3_conv_block(x: SphericalPointCloud, W, intra_idx):
    """IntraSO3ConvBlock: anchor-neighborhood grouping + BasicSO3Conv
    + InstanceNorm2d(affine=False) + ReLU (conv/norm/relu fused in Pallas)."""
    B, C_in, P, A = x.feats.shape
    ks = intra_idx.shape[1]
    # TODO(synk): gather along A in-kernel instead of materializing the ks-duplicated tensor.
    grouped = x.feats[:, :, :, intra_idx]                 # (B, C_in, P, A, ks)
    grouped = jnp.transpose(grouped, (0, 1, 4, 2, 3))     # (B, C_in, ks, P, A)
    grouped = grouped.reshape(B, C_in * ks, P * A)
    C_out = W.shape[0]
    feat = so3conv_norm_relu(grouped, W).reshape(B, C_out, P, A)
    return SphericalPointCloud(x.xyz, feat, x.anchors)


def inter_so3_conv_block(x: SphericalPointCloud, W, kernel_pts, radius, sigma,
                         n_neighbor, stride, inter_idx=None, inter_w=None):
    """InterSO3ConvBlock (stride == 1 path)."""
    assert stride == 1  # TODO(synk): stride>1 furthest-point-sampling path not implemented
    B, C_in, P, A = x.feats.shape
    ks = kernel_pts.shape[0]
    pts = jnp.transpose(x.xyz, (0, 2, 1))                 # (B, P, 3)

    if inter_idx is None:
        # TODO(synk): vgtk uses a CUDA ball query; approximated with kNN + radius mask.
        d2 = jnp.sum((pts[:, :, None, :] - pts[:, None, :, :]) ** 2, axis=-1)
        inter_idx = jnp.argsort(d2, axis=-1)[:, :, :n_neighbor].astype(jnp.int32)

    if inter_w is None:
        nbr_xyz = jax.vmap(lambda p, i: p[i])(pts, inter_idx)          # (B, P, NN, 3)
        rel = nbr_xyz - pts[:, :, None, :]                             # relative coords
        rot_k = jnp.einsum('aij,kj->aki', x.anchors, kernel_pts)       # (A, KS, 3)
        diff = rel[:, :, None, None, :, :] - rot_k[None, None, :, :, None, :]
        dist2 = jnp.sum(diff * diff, axis=-1)                          # (B, P, A, KS, NN)
        inter_w = jnp.exp(-dist2 / (2.0 * sigma))                      # Gaussian weighting
        in_ball = (jnp.sum(rel * rel, axis=-1) <= radius ** 2)         # (B, P, NN)
        inter_w = inter_w * in_ball[:, :, None, None, :].astype(inter_w.dtype)

    NN = inter_idx.shape[-1]
    # TODO(synk): gather neighbor features in-kernel (scalar-prefetched inter_idx +
    #             make_async_copy) instead of materializing the NN-duplicated tensor.
    nbr_feats = jax.vmap(lambda f, i: f[:, i, :])(x.feats, inter_idx)  # (B, C, P, NN, A)
    nbr_flat = jnp.transpose(nbr_feats, (0, 3, 1, 2, 4)).reshape(B, NN * C_in, P * A)
    wgt_flat = jnp.transpose(inter_w, (0, 4, 3, 1, 2)).reshape(B, NN * ks, P * A)

    # BasicSO3Conv weight (C_out, C_in*ks) is c-major / kernel-point-minor (vgtk layout);
    # reorder columns to k-major (k*C_in + c) to match the kernel's grouped-row layout.
    C_out = W.shape[0]
    W_km = jnp.transpose(W.reshape(C_out, C_in, ks), (0, 2, 1)).reshape(C_out, C_in * ks)

    feat = inter_so3conv_norm_relu(nbr_flat, wgt_flat, W_km, NN, C_in, ks)
    feat = feat.reshape(B, C_out, P, A)
    sample_idx = None                                    # stride == 1 -> no down-sampling
    return inter_idx, inter_w, sample_idx, SphericalPointCloud(x.xyz, feat, x.anchors)


def separable_so3_conv_block(x: SphericalPointCloud, w, args, inter_idx, inter_w):
    """SeparableSO3ConvBlock: inter conv -> intra conv -> skip 1x1 conv + add."""
    B, C_in, P, A = x.feats.shape
    skip_feature = x.feats
    inter_idx, inter_w, sample_idx, x2 = inter_so3_conv_block(
        x, w['W_inter'], w['kernel_pts'], args['radius'], args['sigma'],
        args['n_neighbor'], args['stride'], inter_idx, inter_w)
    if args['kanchor'] > 1:
        x2 = intra_so3_conv_block(x2, w['W_intra'], w['intra_idx'])
    # TODO(synk): stride > 1 skip-feature batched_index_select not implemented (stride==1 here).
    # Skip path: Conv2d(dim_in, dim_out, 1) + InstanceNorm2d(affine=False) + ReLU.
    # (The Conv2d bias is mathematically a no-op through the non-affine InstanceNorm.)
    C_out = w['W_skip'].shape[0]
    skip = so3conv_norm_relu(skip_feature.reshape(B, C_in, P * A), w['W_skip'])
    skip = skip.reshape(B, C_out, P, A)
    x_out = SphericalPointCloud(x2.xyz, x2.feats + skip, x2.anchors)
    return inter_idx, inter_w, sample_idx, x_out


# ---------------------------------------------------------------------------
# Deterministic synthetic parameters
# ---------------------------------------------------------------------------
def _xavier_normal(key, c_out, k, gain=1.0):
    # nn.init.xavier_normal_ on a (c_out, k, 1, 1) weight (original gain=0.001;
    # gain=1.0 here for better-conditioned synthetic activations).
    std = gain * np.sqrt(2.0 / (c_out + k))
    return std * jax.random.normal(key, (c_out, k), jnp.float32)


def _make_anchors(kanchor):
    angs = 2.0 * np.pi * np.arange(kanchor) / kanchor
    mats = np.stack([np.array([[np.cos(t), -np.sin(t), 0.0],
                               [np.sin(t), np.cos(t), 0.0],
                               [0.0, 0.0, 1.0]]) for t in angs])
    return jnp.asarray(mats, jnp.float32)


def _make_intra_idx(kanchor, ks):
    return jnp.asarray([[(a + j) % kanchor for j in range(ks)] for a in range(kanchor)],
                       jnp.int32)


def _make_kernel_points(kernel_size, radius):
    pts = [np.zeros(3)]
    for k in range(1, kernel_size):
        t = 2.0 * np.pi * (k - 1) / max(kernel_size - 1, 1)
        pts.append(radius * np.array([np.cos(t), np.sin(t), 0.0]))
    return jnp.asarray(np.stack(pts), jnp.float32)


# ---------------------------------------------------------------------------
# BasicSO3ConvBlock
# ---------------------------------------------------------------------------
class BasicSO3ConvBlock:
    def __init__(self, params, key):
        self.params = params
        self.layer_types = [p['type'] for p in params]
        self.block_weights = []
        for p in params:
            a = p['args']
            key, k1, k2, k3 = jax.random.split(key, 4)
            if p['type'] == 'intra_block':
                w = {'W': _xavier_normal(k1, a['dim_out'], a['dim_in'] * INTRA_KERNEL_SIZE),
                     'intra_idx': _make_intra_idx(KANCHOR, INTRA_KERNEL_SIZE)}
            elif p['type'] == 'inter_block':
                w = {'W': _xavier_normal(k1, a['dim_out'], a['dim_in'] * a['kernel_size']),
                     'kernel_pts': _make_kernel_points(a['kernel_size'], a['radius'])}
            elif p['type'] == 'separable_block':
                w = {'W_inter': _xavier_normal(k1, a['dim_out'], a['dim_in'] * a['kernel_size']),
                     'W_intra': _xavier_normal(k2, a['dim_out'], a['dim_out'] * INTRA_KERNEL_SIZE),
                     'W_skip': _xavier_normal(k3, a['dim_out'], a['dim_in']),
                     'kernel_pts': _make_kernel_points(a['kernel_size'], a['radius']),
                     'intra_idx': _make_intra_idx(a['kanchor'], INTRA_KERNEL_SIZE)}
            else:
                raise ValueError(f"No such type of SO3Conv {p['type']}")
            self.block_weights.append(w)

    def __call__(self, x: SphericalPointCloud) -> SphericalPointCloud:
        inter_idx, inter_w = None, None
        for p, w in zip(self.params, self.block_weights):
            a = p['args']
            if p['type'] in ('inter', 'inter_block'):
                inter_idx, inter_w, _, x = inter_so3_conv_block(
                    x, w['W'], w['kernel_pts'], a['radius'], a['sigma'],
                    a['n_neighbor'], a['stride'], inter_idx, inter_w)
                if a['stride'] > 1:
                    inter_idx, inter_w = None, None
            elif p['type'] == 'separable_block':
                inter_idx, inter_w, _, x = separable_so3_conv_block(x, w, a, inter_idx, inter_w)
                if a['stride'] > 1:
                    inter_idx, inter_w = None, None
            elif p['type'] == 'intra_block':
                x = intra_so3_conv_block(x, w['W'], w['intra_idx'])
            else:
                raise ValueError(f"No such type of SO3Conv {p['type']}")
        return x


# ---------------------------------------------------------------------------
# Demo / test
# ---------------------------------------------------------------------------
if __name__ == "__main__":
    B, P, A, C0 = 2, 32, KANCHOR, 4       # P * A = 128 (one full lane row)

    params = [
        {'type': 'intra_block',
         'args': {'dim_in': C0, 'dim_out': 8, 'norm': None, 'activation': 'relu',
                  'dropout_rate': 0}},
        {'type': 'inter_block',
         'args': {'dim_in': 8, 'dim_out': 16, 'kernel_size': 3, 'stride': 1,
                  'radius': 0.4, 'sigma': 0.08, 'n_neighbor': 8, 'multiplier': 1,
                  'kanchor': KANCHOR, 'lazy_sample': True, 'norm': None,
                  'activation': 'relu', 'pooling': 'none', 'dropout_rate': 0}},
        {'type': 'separable_block',
         'args': {'dim_in': 16, 'dim_out': 16, 'kernel_size': 3, 'stride': 1,
                  'radius': 0.4, 'sigma': 0.08, 'n_neighbor': 8, 'multiplier': 1,
                  'kanchor': KANCHOR, 'lazy_sample': True, 'norm': None,
                  'activation': 'relu', 'pooling': 'none', 'dropout_rate': 0}},
    ]

    key = jax.random.PRNGKey(0)
    k_xyz, k_feat, k_param = jax.random.split(key, 3)
    xyz = jax.random.uniform(k_xyz, (B, 3, P), jnp.float32)
    feats = jax.random.normal(k_feat, (B, C0, P, A), jnp.float32)
    anchors = _make_anchors(KANCHOR)
    x = SphericalPointCloud(xyz, feats, anchors)

    # --- spot-check the Pallas kernels against plain-JAX references ----------
    # (M = 256 with m_tile_cap = 128 exercises the tiled two-phase InstanceNorm path;
    #  inputs are pre-quantized to bf16-representable values for a tight comparison.)
    q = lambda a: a.astype(jnp.bfloat16).astype(jnp.float32)
    kk = jax.random.PRNGKey(7)
    xg = q(jax.random.normal(kk, (2, 12, 256), jnp.float32))
    wg = q(0.1 * jax.random.normal(jax.random.fold_in(kk, 1), (8, 12), jnp.float32))
    np.testing.assert_allclose(np.asarray(so3conv_norm_relu(xg, wg, m_tile_cap=128)),
                               np.asarray(_ref_so3conv_norm_relu(xg, wg)),
                               rtol=1e-2, atol=1e-2)

    NNt, Ct, KSt, Mt_test, Cot = 8, 8, 3, 256, 16
    nbr = q(jax.random.normal(jax.random.fold_in(kk, 2), (2, NNt, Ct, Mt_test), jnp.float32))
    wgt = q(jax.random.uniform(jax.random.fold_in(kk, 3), (2, NNt, KSt, Mt_test), jnp.float32))
    wflat = q(0.1 * jax.random.normal(jax.random.fold_in(kk, 4), (Cot, Ct * KSt), jnp.float32))
    w_km = jnp.transpose(wflat.reshape(Cot, Ct, KSt), (0, 2, 1)).reshape(Cot, Ct * KSt)
    got = inter_so3conv_norm_relu(nbr.reshape(2, NNt * Ct, Mt_test),
                                  wgt.reshape(2, NNt * KSt, Mt_test),
                                  w_km, NNt, Ct, KSt, m_tile_cap=128)
    ref = _ref_inter_so3conv_norm_relu(nbr, wgt, wflat)
    np.testing.assert_allclose(np.asarray(got), np.asarray(ref), rtol=2e-2, atol=2e-2)

    # --- run the full block stack -------------------------------------------
    model = BasicSO3ConvBlock(params, k_param)
    forward = jax.jit(lambda inp: model(inp))
    out = forward(x)
    jax.block_until_ready(out.feats)

    assert out.feats.shape == (B, 16, P, A)
    assert out.xyz.shape == (B, 3, P)
    assert bool(jnp.all(jnp.isfinite(out.feats)))
    print("KERNEL_OK")
</pallas_src>

<mosaic_0001>
module attributes {stable_mosaic.version = 11 : i64} {
  func.func @_so3conv_norm_relu_kernel(%arg0: i32, %arg1: i32, %arg2: memref<1x12x128xbf16, #tpu.memory_space<vmem>>, %arg3: memref<8x12xbf16, #tpu.memory_space<vmem>>, %arg4: memref<1x8x256xf32, #tpu.memory_space<vmem>>, %arg5: memref<8x1xf32, #tpu.memory_space<vmem>>, %arg6: memref<8x1xf32, #tpu.memory_space<vmem>>) attributes {dimension_semantics = [#tpu.dimension_semantics<parallel>, #tpu.dimension_semantics<arbitrary>], iteration_bounds = array<i64: 2, 2>, scalar_prefetch = 0 : i64, scratch_operands = 2 : i64, tpu.core_type = #tpu.core_type<tc>, window_params = [{transform_indices = @transform_0, window_bounds = array<i64: 1, 12, 128>}, {pipeline_mode = #tpu.pipeline_mode<synchronous>, transform_indices = @transform_1, window_bounds = array<i64: 8, 12>}, {transform_indices = @transform_2, window_bounds = array<i64: 1, 8, 256>}]} {
    %c0_i32 = arith.constant 0 : i32
    %0 = arith.cmpi eq, %arg1, %c0_i32 : i32
    %1 = arith.extui %0 : i1 to i32
    %c0_i32_0 = arith.constant 0 : i32
    %2 = arith.cmpi ne, %1, %c0_i32_0 : i32
    scf.if %2 {
      %cst_18 = arith.constant 0.000000e+00 : f32
      %27 = vector.broadcast %cst_18 : f32 to vector<8x1xf32>
      %c0_19 = arith.constant 0 : index
      %c0_20 = arith.constant 0 : index
      %28 = vector.load %arg5[%c0_19, %c0_20] : memref<8x1xf32, #tpu.memory_space<vmem>>, vector<8x1xf32>
      tpu.vector_store %arg5[%c0_19, %c0_20], %27 {strides = array<i32>} : memref<8x1xf32, #tpu.memory_space<vmem>>, vector<8x1xf32>,
      %cst_21 = arith.constant 0.000000e+00 : f32
      %29 = vector.broadcast %cst_21 : f32 to vector<8x1xf32>
      %c0_22 = arith.constant 0 : index
      %c0_23 = arith.constant 0 : index
      %30 = vector.load %arg6[%c0_22, %c0_23] : memref<8x1xf32, #tpu.memory_space<vmem>>, vector<8x1xf32>
      tpu.vector_store %arg6[%c0_22, %c0_23], %29 {strides = array<i32>} : memref<8x1xf32, #tpu.memory_space<vmem>>, vector<8x1xf32>,
    } else {
    }
    %c0 = arith.constant 0 : index
    %c0_1 = arith.constant 0 : index
    %3 = vector.load %arg3[%c0, %c0_1] : memref<8x12xbf16, #tpu.memory_space<vmem>>, vector<8x12xbf16>
    %c0_2 = arith.constant 0 : index
    %c0_3 = arith.constant 0 : index
    %c0_4 = arith.constant 0 : index
    %4 = vector.load %arg2[%c0_2, %c0_3, %c0_4] : memref<1x12x128xbf16, #tpu.memory_space<vmem>>, vector<1x12x128xbf16>
    %5 = vector.shape_cast %4 : vector<1x12x128xbf16> to vector<12x128xbf16>
    %cst = arith.constant dense<0.000000e+00> : vector<8x128xf32>
    %6 = tpu.matmul %3, %5, %cst {dimension_numbers = #tpu.dot_dimension_numbers<[1], [0], [0], [1], [0, 0, 1, 1], [], []>} : vector<8x12xbf16>, vector<12x128xbf16>, vector<8x128xf32> -> vector<8x128xf32>
    %c0_5 = arith.constant 0 : index
    %c0_6 = arith.constant 0 : index
    %7 = vector.load %arg5[%c0_5, %c0_6] : memref<8x1xf32, #tpu.memory_space<vmem>>, vector<8x1xf32>
    %cst_7 = arith.constant dense<0.000000e+00> : vector<8xf32>
    %8 = vector.multi_reduction <add>, %6, %cst_7 [1] : vector<8x128xf32> to vector<8xf32>
    %9 = vector.shape_cast %8 : vector<8xf32> to vector<8x1xf32>
    %10 = arith.addf %7, %9 : vector<8x1xf32>
    %c0_8 = arith.constant 0 : index
    %c0_9 = arith.constant 0 : index
    %11 = vector.load %arg5[%c0_8, %c0_9] : memref<8x1xf32, #tpu.memory_space<vmem>>, vector<8x1xf32>
    tpu.vector_store %arg5[%c0_8, %c0_9], %10 {strides = array<i32>} : memref<8x1xf32, #tpu.memory_space<vmem>>, vector<8x1xf32>,
    %c0_10 = arith.constant 0 : index
    %c0_11 = arith.constant 0 : index
    %12 = vector.load %arg6[%c0_10, %c0_11] : memref<8x1xf32, #tpu.memory_space<vmem>>, vector<8x1xf32>
    %13 = arith.mulf %6, %6 : vector<8x128xf32>
    %cst_12 = arith.constant dense<0.000000e+00> : vector<8xf32>
    %14 = vector.multi_reduction <add>, %13, %cst_12 [1] : vector<8x128xf32> to vector<8xf32>
    %15 = vector.shape_cast %14 : vector<8xf32> to vector<8x1xf32>
    %16 = arith.addf %12, %15 : vector<8x1xf32>
    %c0_13 = arith.constant 0 : index
    %c0_14 = arith.constant 0 : index
    %17 = vector.load %arg6[%c0_13, %c0_14] : memref<8x1xf32, #tpu.memory_space<vmem>>, vector<8x1xf32>
    tpu.vector_store %arg6[%c0_13, %c0_14], %16 {strides = array<i32>} : memref<8x1xf32, #tpu.memory_space<vmem>>, vector<8x1xf32>,
    %c128_i32 = arith.constant 128 : i32
    %18 = arith.muli %arg1, %c128_i32 : i32
    %19 = tpu.assume_multiple %18, 128 : i32
    %c0_15 = arith.constant 0 : index
    %c0_16 = arith.constant 0 : index
    %20 = arith.index_cast %19 : i32 to index
    %21 = vector.load %arg4[%c0_15, %c0_16, %20] : memref<1x8x256xf32, #tpu.memory_space<vmem>>, vector<1x8x128xf32>
    %22 = vector.shape_cast %21 : vector<1x8x128xf32> to vector<8x128xf32>
    %23 = vector.shape_cast %6 : vector<8x128xf32> to vector<1x8x128xf32>
    tpu.vector_store %arg4[%c0_15, %c0_16, %20], %23 {strides = array<i32>} : memref<1x8x256xf32, #tpu.memory_space<vmem>>, vector<1x8x128xf32>,
    %c1_i32 = arith.constant 1 : i32
    %24 = arith.cmpi eq, %arg1, %c1_i32 : i32
    %25 = arith.extui %24 : i1 to i32
    %c0_i32_17 = arith.constant 0 : i32
    %26 = arith.cmpi ne, %25, %c0_i32_17 : i32
    scf.if %26 {
      %c0_18 = arith.constant 0 : index
      %c0_19 = arith.constant 0 : index
      %27 = vector.load %arg5[%c0_18, %c0_19] : memref<8x1xf32, #tpu.memory_space<vmem>>, vector<8x1xf32>
      %cst_20 = arith.constant 3.906250e-03 : f32
      %28 = vector.broadcast %cst_20 : f32 to vector<8x1xf32>
      %29 = arith.mulf %27, %28 : vector<8x1xf32>
      %c0_21 = arith.constant 0 : index
      %c0_22 = arith.constant 0 : index
      %30 = vector.load %arg6[%c0_21, %c0_22] : memref<8x1xf32, #tpu.memory_space<vmem>>, vector<8x1xf32>
      %cst_23 = arith.constant 3.906250e-03 : f32
      %31 = vector.broadcast %cst_23 : f32 to vector<8x1xf32>
      %32 = arith.mulf %30, %31 : vector<8x1xf32>
      %33 = arith.mulf %29, %29 : vector<8x1xf32>
      %34 = arith.subf %32, %33 : vector<8x1xf32>
      %cst_24 = arith.constant 0.000000e+00 : f32
      %35 = vector.broadcast %cst_24 : f32 to vector<8x1xf32>
      %36 = arith.maximumf %34, %35 : vector<8x1xf32>
      %cst_25 = arith.constant 9.99999974E-6 : f32
      %37 = vector.broadcast %cst_25 : f32 to vector<8x1xf32>
      %38 = arith.addf %36, %37 : vector<8x1xf32>
      %39 = math.rsqrt %38 : vector<8x1xf32>
      %c0_26 = arith.constant 0 : index
      %c0_27 = arith.constant 0 : index
      %c0_28 = arith.constant 0 : index
      %40 = vector.load %arg4[%c0_26, %c0_27, %c0_28] : memref<1x8x256xf32, #tpu.memory_space<vmem>>, vector<1x8x256xf32>
      %41 = vector.shape_cast %40 : vector<1x8x256xf32> to vector<8x256xf32>
      %42 = vector.broadcast %29 : vector<8x1xf32> to vector<8x256xf32>
      %43 = arith.subf %41, %42 : vector<8x256xf32>
      %44 = vector.broadcast %39 : vector<8x1xf32> to vector<8x256xf32>
      %45 = arith.mulf %43, %44 : vector<8x256xf32>
      %cst_29 = arith.constant 0.000000e+00 : f32
      %46 = vector.broadcast %cst_29 : f32 to vector<8x256xf32>
      %47 = arith.maximumf %45, %46 : vector<8x256xf32>
      %c0_30 = arith.constant 0 : index
      %c0_31 = arith.constant 0 : index
      %c0_32 = arith.constant 0 : index
      %48 = vector.load %arg4[%c0_30, %c0_31, %c0_32] : memref<1x8x256xf32, #tpu.memory_space<vmem>>, vector<1x8x256xf32>
      %49 = vector.shape_cast %48 : vector<1x8x256xf32> to vector<8x256xf32>
      %50 = vector.shape_cast %47 : vector<8x256xf32> to vector<1x8x256xf32>
      tpu.vector_store %arg4[%c0_30, %c0_31, %c0_32], %50 {strides = array<i32>} : memref<1x8x256xf32, #tpu.memory_space<vmem>>, vector<1x8x256xf32>,
    } else {
    }
    return
  }
  func.func @transform_0(%arg0: i32, %arg1: i32) -> (i32, i32, i32) {
    %c0_i32 = arith.constant 0 : i32
    %c0_i32_0 = arith.constant 0 : i32
    return %arg0, %c0_i32, %arg1 : i32, i32, i32
  }
  func.func @transform_1(%arg0: i32, %arg1: i32) -> (i32, i32) {
    %c0_i32 = arith.constant 0 : i32
    %c0_i32_0 = arith.constant 0 : i32
    %c0_i32_1 = arith.constant 0 : i32
    return %c0_i32, %c0_i32_0 : i32, i32
  }
  func.func @transform_2(%arg0: i32, %arg1: i32) -> (i32, i32, i32) {
    %c0_i32 = arith.constant 0 : i32
    %c0_i32_0 = arith.constant 0 : i32
    %c0_i32_1 = arith.constant 0 : i32
    return %arg0, %c0_i32, %c0_i32_0 : i32, i32, i32
  }
}

</mosaic_0001>

<bundles_post_ra>
// kernel: tpu_custom_call.1
= control target key start
LH: loop header
LB: loop body
LE: loop exit
PB: predicated region body
PF: predicated region fallthrough
CT: control target
= control target key end

     0   :  { %7 = vsyncpa [#allocation6], 0  ;;  %s841_s0 = inlined_call_operand.vmem [shape: bf16[2,12,256], index: 0, kind: input, shape index: {}]   ;;  %s842_s1 = inlined_call_operand.vmem [shape: bf16[8,12], index: 1, kind: input, shape index: {}]   ;;  %s843_s2 = inlined_call_operand.hbm [shape: f32[2,8,256], index: 2, kind: output, shape index: {}]  }
   0x1   :  { %9 = vsyncpa [#allocation6 + $0x1], 0  ;;  %s670_s9 = smov 0   ;;  %s672_s10 = smov 0  }
   0x2   :  { %s674_s11 = smov 0   ;;  %s676_s12 = smov 0  }
   0x3   :  { %s678_s13 = smov 0   ;;  %s680_s14 = smov 0  }
   0x4   :  { %s682_s15 = smov 0   ;;  %s684_s16 = smov 0  }
   0x5   :  { %s686_s17 = smov 0   ;;  %s688_s18 = smov 0  }
   0x6 LB: > { %s415_s19 = sadd.s32 4294967295, %s648_s18   ;;  %s416_s20 = sadd.s32 4294967294, %s648_s18   ;;  %s648_s18 = sphi %s688_s18, %s15_s18   ;;  %s644_s17 = sphi %s686_s17, %s855_s17   ;;  %s640_s16 = sphi %s684_s16, %s854_s16   ;;  %s636_s15 = sphi %s682_s15, %s853_s15   ;;  %s632_s14 = sphi %s680_s14, %s852_s14   ;;  %s628_s13 = sphi %s678_s13, %s851_s13   ;;  %s624_s12 = sphi %s676_s12, %s850_s12   ;;  %s620_s11 = sphi %s674_s11, %s849_s11   ;;  %s616_s10 = sphi %s672_s10, %s848_s10   ;;  %s612_s9 = sphi %s670_s9, %s847_s9  }
   0x7   : > { %s24_s21 = sadd.s32 1, %s640_s16  ;;  %s27_s22 = sadd.s32 1, %s644_s17 }
   0x8   : > { %p25_p0 = scmp.ge.s32.totalorder %s24_s21, 2  ;;  %s36_s23 = sadd.s32 1, %s628_s13 }
   0x9   : > { %p43_p1 = scmp.ne.s32.totalorder %s628_s13, %s624_s12  ;;  %p44_p2 = scmp.eq.s32.totalorder %s648_s18, 0 }
   0xa   : > { %s857_s21 = smov (%p25_p0, %s24_s21), 0  ;;  %s859_s22 = smov (!%p25_p0, %s27_s22), %s644_s17 }
   0xb   : > { %s32_s24 = ssub.s32 %s640_s16, %s857_s21  ;;  %p733_p3 = por %p44_p2, %p43_p1 }
   0xc   : > { %p29_p4 = scmp.ge.s32.totalorder %s859_s22, 2  ;;  %s83_s26 = sadd.s32 1, %s620_s11 }
   0xd   : > { %p93_p5 = scmp.ne.s32.totalorder %s620_s11, %s616_s10  ;;  %p94_p6 = scmp.eq.s32.totalorder %s415_s19, 3 }
   0xe   : > { %s861_s22 = smov (%p29_p4, %s859_s22), 0  ;;  %p99_p8 = scmp.ne.s32.totalorder %s616_s10, %s612_s9 }
   0xf   : > { %p742_p7 = por %p94_p6, %p93_p5  ;;  %s31_s28 = ssub.s32 %s644_s17, %s861_s22 }
  0x10   : > { %p100_p9 = scmp.eq.s32.totalorder %s416_s20, 3  ;;  %s33_s29 = sor.u32 %s32_s24, %s31_s28 }
  0x11   : > { %p81_p10 = scmp.eq.s32.totalorder %s31_s28, 0  ;;  %p34_p11 = scmp.eq.s32.totalorder %s33_s29, 0 }
  0x12   : > { %p750_p12 = por %p100_p9, %p99_p8  ;;  %p418_p13 = scmp.ge.s32.totalorder %s648_s18, 4 }
  0x13   : > { %s755_s3 = scalar_select %p81_p10, %s620_s11, %s83_s26  }
  0x14   : > { %s758_s4 = scalar_select %p34_p11, %s628_s13, %s36_s23  }
  0x15   : > { %119 = sbr.rel (%p418_p13) target bundleno = 33 (0x21), region = 20 }
  0x1a   : > { %122 = sbr.rel (!%p733_p3) target bundleno = 33 (0x21), region = 24  ;;  %s124_s5 = sand.u32 (%p733_p3), 1, %s628_s13  }
  0x1b   : > { %s420_s6 = sshll.u32 (%p733_p3), %s644_s17, 2  ;;  %s419_s7 = sshll.u32 (%p733_p3), %s124_s5, 3 }
  0x1c   : > { %s128_s8 = sadd.s32 (%p733_p3), %s640_s16, %s420_s6  ;;  %s126_s23 = scalar_lea.vmem (%p733_p3), [#allocation4], %s419_s7 }
  0x1d   : > { %s421_s19 = sshll.u32 (%p733_p3), %s128_s8, 2 }
  0x1e   : > { %s130_s26 = scalar_lea.vmem (%p733_p3), %s841_s0, %s421_s19 }
  0x1f   : > { %v147_v0 = vld [vmem:[%s130_s26] sm:$0xf]  ;;  %v149_v1 = vld [vmem:[%s130_s26 + $0x8] sm:$0xf] }
  0x20   : > { %148 = vst [vmem:[%s126_s23] sm:$0xf] %v147_v0  ;;  %150 = vst [vmem:[%s126_s23 + $0x4] sm:$0xf] %v149_v1 }
  0x21 PF: > { %p422_p0 = scmp.ge.s32.totalorder %s648_s18, 1  ;;  %p177_p1 = scmp.lt.s32.totalorder %s648_s18, 5 }
  0x23   : > { %p178_p2 = pnand %p422_p0, %p177_p1 }
  0x24   : > { %s184_s25 = sand.u32 (!%p178_p2), 1, %s624_s12   ;;  %s202_s28 = sand.u32 (!%p178_p2), 1, %s616_s10  }
  0x25   : > { %181 = sbr.rel (%p178_p2) target bundleno = 573 (0x23d), region = 65  ;;  %s423_s29 = sshll.u32 (!%p178_p2), %s184_s25, 3 }
  0x26   : > { %s424_s5 = sshll.u32 (!%p178_p2), %s202_s28, 4  ;;  %s186_s6 = scalar_lea.vmem (!%p178_p2), [#allocation4], %s423_s29 }
  0x27   : > { %s775_s7 = scalar_lea.vmem (!%p178_p2), [#allocation5], %s424_s5  ;;  %p425_p3 = scmp.ne.s32.totalorder (!%p178_p2), %s632_s14, 0 }
  0x2a   : > { %209 = sbr.rel (%p425_p3) target bundleno = 49 (0x31), region = 73 }
  0x2f   : > { %vm210_vm0 = vcmask 7168   ;;  %v650_v2 = vmov 0.0  }
  0x30   : > { %211 = vst.msk [vmem:[#allocation2] sm:$0xff] %vm210_vm0, %v650_v2  ;;  %212 = vst.msk [vmem:[#allocation3] sm:$0xff] %vm210_vm0, %v650_v2 }
  0x31 PF: > { %vm225_vm1 = vcmask 1045504   ;;  %v651_v3 = vmov 0.0   ;;  %v536_v4 = vld [vmem:[%s186_s6] sm:$0x3f]   ;;  %vm652_vm2 = vmmov 0   ;;  %vm221_vm3 = vcmask 97280  }
  0x32   : > { %439 = vmatprep.subr.bf16.mxu0 %v651_v3  ;;  %441 = vmatprep.mubr.msk.bf16.mxu0 %vm652_vm2, %v651_v3  ;;  %v227_v5 = vsel %vm225_vm1, %v536_v4, 0  ;;  %v213_v6 = vld [vmem:[%s842_s1] sm:$0xf]  ;;  %s428_s19 = sshll.u32 %s632_s14, 7  ;;  %vm273_vm4 = vcmask 7168   ;;  %p430_p4 = scmp.ne.s32.totalorder %s632_s14, 1 }
  0x33   : > { %440 = vmatpush3.bf16.msra.mxu0 %v227_v5  ;;  %s282_s20 = sshra.s32 %s428_s19, 7 }
  0x34   : > { %s429_s24 = sshll.u32 %s282_s20, 3 }
  0x35   : > { %s285_s26 = scalar_lea.vmem %s775_s7, %s429_s24 [#allocation5] }
  0x36   : > { %442 = vmatmul.mubr.msk.bf16.vlgmr.msra.gmra.mxu0 %vm221_vm3, %v213_v6 }
  0x37   : > { %v269_v12 = vld [vmem:[#allocation2] sm:$0xff]  ;;  %v275_v15 = vld [vmem:[#allocation3] sm:$0xff] }
  0xf6   : > { %v263_v7 = vpop.f32.mrf.mxu0 }
  0xf7   : > { %286 = vst [vmem:[%s285_s26] sm:$0xff] %v263_v7  ;;  %270 = vadd.xlane.f32.xlu0 %v263_v7  ;;  %v276_v9 = vmul.f32 %v263_v7, %v263_v7 }
  0xf8   : > { %v443_v8 = vpop.f32.mrf.mxu0 }
  0xfa   : > { %v266_v10 = vpop.f32.mrf.mxu0 }
  0xfb   : > { %277 = vadd.xlane.f32.xlu0 %v276_v9 }
  0xfc   : > { %v444_v11 = vpop.f32.mrf.mxu0 }
 0x180   : > { %v271_v13 = vpop.xlane.xlu0 %270 }
 0x181   : > { %v272_v14 = vadd.f32 %v271_v13, %v269_v12 }
 0x183   : > { %274 = vst.msk [vmem:[#allocation2] sm:$0xff] %vm273_vm4, %v272_v14  ;;  %290 = sbr.rel (%p430_p4) target bundleno = 550 (0x226), region = 77 }
 0x184   : > { %v278_v16 = vpop.xlane.xlu0 %277 }
 0x185   : > { %v279_v17 = vadd.f32 %v278_v16, %v275_v15 }
 0x187   : > { %280 = vst.msk [vmem:[#allocation3] sm:$0xff] %vm273_vm4, %v279_v17 }
 0x188   : > { %v653_v20 = vmov 0   ;;  %v300_v29 = vld [vmem:[%s775_s7] sm:$0xff]  ;;  %v301_v30 = vld [vmem:[%s775_s7 + $0x8] sm:$0xff] }
 0x189   : > { %537 = vset.pattern.permute.xlu0 %v653_v20 }
 0x18a   : > { %v291_v18 = vld [vmem:[#allocation2] sm:$0xff] }
 0x18b   : > { %v292_v21 = vmul.f32 0.00390625, %v291_v18 }
 0x18d   : > { %304 = vperm.xlu0 %537, %v292_v21   ;;  %v295_v23 = vmul.f32 %v292_v21, %v292_v21 }
 0x18e   : > { %v293_v19 = vld [vmem:[#allocation3] sm:$0xff] }
 0x18f   : > { %v294_v22 = vmul.f32 0.00390625, %v293_v19 }
 0x191   : > { %v296_v24 = vsub.f32 %v294_v22, %v295_v23 }
 0x193   : > { %v297_v25 = vmax.f32 %v296_v24, 0.0 }
 0x195   : > { %v298_v26 = vadd.f32 1e-05, %v297_v25 }
 0x197   : > { %538 = vrsqrt.f32 %v298_v26 }
 0x1a4   : > { %v539_v27 = vpop.eup %538 }
 0x1a5   : > { %311 = vperm.xlu0 %537, %v539_v27  }
 0x208   : > { %v305_v28 = vpop.permute.xlu0 %304 }
 0x209   : > { %v307_v31 = vsub.f32 %v300_v29, %v305_v28  ;;  %v308_v32 = vsub.f32 %v301_v30, %v305_v28 }
 0x220   : > { %v312_v33 = vpop.permute.xlu0 %311 }
 0x221   : > { %v314_v34 = vmul.f32 %v312_v33, %v307_v31  ;;  %v315_v35 = vmul.f32 %v312_v33, %v308_v32 }
 0x223   : > { %v316_v36 = vmax.f32 %v314_v34, 0.0  ;;  %v317_v37 = vmax.f32 %v315_v35, 0.0 }
 0x225   : > { %318 = vst [vmem:[%s775_s7] sm:$0xff] %v316_v36  ;;  %319 = vst [vmem:[%s775_s7 + $0x8] sm:$0xff] %v317_v37 }
 0x226 PF: > { %s436_s14 = sshll.u32 %s636_s15, 8  ;;  %s335_s5 = sshll.u32 %s775_s7, 4  ;;  %s336_s5 = int_to_ptr.vmem [resolvable:$true] %s335_s5 }
 0x227   : > { %s333_s29 = scalar_lea.hbm %s843_s2, %s436_s14  ;;  %s321_s6 = scalar_lea.sflag [#allocation6], %s202_s28 }
 0x228   : > { %s540_s12 = scalar_lea.vmem %s336_s5, 256  ;;  %s654_s8 = smov [#allocation5]  }
 0x229   : > { %p541_p5 = scmp.ne.s32.totalorder %s336_s5, %s540_s12  ;;  %s544_s19 = sshll.u32 %s654_s8, 4  ;;  %s545_s19 = int_to_ptr.vmem [resolvable:$false] %s544_s19 }
 0x22a   : > { %s546_s20 = scalar_lea.vmem %s545_s19, 512  ;;  %p547_p9 = scmp.lt.s32.totalorder %s336_s5, %s545_s19 }
 0x22b   : > { %p542_p6 = pnand %p541_p5, %p742_p7  ;;  %p548_p10 = scmp.lt.s32.totalorder %s546_s20, %s540_s12 }
 0x22d   : > { %p543_p8 = pneg %p542_p6  ;;  %p549_p11 = por %p548_p10, %p547_p9 }
 0x22f   : > { %p550_p13 = pnand %p549_p11, %p543_p8 }
 0x231   : > { %553 = shalt.err (!%p550_p13)
}
 0x232   : > { %s554_s15 = scalar_lea.hbm %s333_s29, 256  ;;  %s558_s24 = scalar_lea.hbm %s843_s2, 512 }
 0x233   : > { %p555_p0 = scmp.ne.s32.totalorder %s333_s29, %s554_s15  ;;  %p559_p3 = scmp.lt.s32.totalorder %s333_s29, %s843_s2 }
 0x234   : > { %p560_p4 = scmp.lt.s32.totalorder %s558_s24, %s554_s15 }
 0x235   : > { %p556_p1 = pnand %p555_p0, %p742_p7 }
 0x236   : > { %p561_p5 = por %p560_p4, %p559_p3 }
 0x237   : > { %p557_p2 = pneg %p556_p1 }
 0x239   : > { %p562_p6 = pnand %p561_p5, %p557_p2 }
 0x23b   : > { %565 = shalt.err (!%p562_p6)
}
 0x23c   : > { %445 = dma.vmem_to_hbm [thread:$0]  (%p742_p7), %s336_s5, 256, %s333_s29, %s321_s6  }
 0x23d PF: > { %p451_p8 = scmp.ge.s32.totalorder %s648_s18, 2  ;;  %s347_s23 = sand.u32 1, %s612_s9  }
 0x23e   : > { %s348_s25 = scalar_lea.sflag [#allocation6], %s347_s23 }
 0x23f   : > { %p448_p9 = pnand %p451_p8, %p750_p12 }
 0x241   : > { %p449_p10 = pneg %p448_p9 }
 0x243   : > { %607 = dma.done.wait (%p449_p10), %s348_s25, 256  }
 0x244   : > { %609 = vsyncadd (%p449_p10), %s348_s25, 4294967040  ;;  %s15_s18 = sadd.s32 1, %s648_s18   ;;  %s847_s9 = smov %s616_s10 }
 0x245   : > { %p12_p11 = scmp.ge.s32.totalorder %s15_s18, 6   ;;  %s848_s10 = smov %s620_s11 }
 0x246   : > { %s849_s11 = smov %s755_s3  ;;  %s850_s12 = smov %s628_s13 }
 0x247   : > { %s851_s13 = smov %s758_s4  ;;  %s852_s14 = smov %s640_s16 }
 0x248   : > { %s853_s15 = smov %s644_s17  ;;  %s854_s16 = smov %s857_s21 }
 0x249   : > { %s855_s17 = smov %s861_s22  ;;  %14 = sbr.rel (!%p12_p11) target bundleno = 6 (0x6), region = 118 }
 0x24e   :  { %353 = vsyncpa [#allocation6], 1 }
 0x24f   :  { %355 = vsyncpa [#allocation6 + $0x1], 1 }

</bundles_post_ra>
